<compile_context>
chip_gen: v7x
topology: tpu7x:2x2x1
jax: 0.10.0
libtpu: 0.0.40
codegen_flags: <defaults>
</compile_context>

<pallas_src>
import functools

import jax
import jax.numpy as jnp
from jax.experimental import pallas as pl
from jax.experimental.pallas import tpu as pltpu

LANE = 128          # lane width (last-dim alignment)
ROW_ALIGN = 16      # bf16 packs 16 rows per sublane group
_SINGLE_BUFFER_RESIDENT_BYTES = 4 << 20   # single-buffer resident weights above this
_VMEM_SOFT_LIMIT = 32 << 20               # default scoped-VMEM budget


def _round_up(n, m):
    return ((n + m - 1) // m) * m


def mlp_kernel(x_ref, w1_ref, b1_ref, w2_ref, b2_ref, wo_ref, bo_ref, out_ref):
    """Fused relu(relu(x@W1+b1)@W2+b2)@Wo+bo; Dropout layers identity (eval).

    x / weights are bf16 (MXU inputs), all dots accumulate in f32, bias add +
    ReLU stay f32 (safe on v5e), output stored as bf16.
    """
    x = x_ref[...]                                                    # bf16 (TB, Dp)

    # fc1 + relu1 (+ drop1 == identity in eval)
    h = jnp.dot(x, w1_ref[...], preferred_element_type=jnp.float32) + b1_ref[...]
    h = jnp.maximum(h, 0.0)

    # fc2 + relu2 (+ drop2 == identity in eval)
    h = jnp.dot(h.astype(jnp.bfloat16), w2_ref[...],
                preferred_element_type=jnp.float32) + b2_ref[...]
    h = jnp.maximum(h, 0.0)

    # out (no activation)
    o = jnp.dot(h.astype(jnp.bfloat16), wo_ref[...],
                preferred_element_type=jnp.float32) + bo_ref[...]
    out_ref[...] = o.astype(out_ref.dtype)                            # bf16 writeback


def _pick_tile(b, tile_b):
    """16-aligned batch tile; >=2 grid steps when the batch allows (v7x 2 TCs)."""
    b_al = _round_up(max(b, 1), ROW_ALIGN)
    if b_al <= ROW_ALIGN:
        return ROW_ALIGN, ROW_ALIGN
    half = _round_up((b_al + 1) // 2, ROW_ALIGN)
    tb = max(ROW_ALIGN, min(tile_b, half))
    return tb, _round_up(b_al, tb)


@functools.partial(jax.jit, static_argnames=("tile_b", "d", "nc"))
def _mlp_forward_jit(x, w1p, b1p, w2p, b2p, wop, bop, *, tile_b, d, nc):
    b = x.shape[0]
    x2d = x.reshape(b, -1)                     # == input.view(input.size(0), -1)
    assert x2d.shape[1] == d, "input_dims mismatch"
    d_p, h1_p = w1p.shape
    h2_p = w2p.shape[1]
    nc_p = wop.shape[1]

    tb, b_p = _pick_tile(b, tile_b)
    grid = (b_p // tb,)

    # Flatten + bf16 cast + zero-pad x inside the jit (single fused XLA op).
    xp = jnp.pad(x2d.astype(jnp.bfloat16), ((0, b_p - b), (0, d_p - d)))

    # Resident (constant index_map) weights/biases: single-buffer them only
    # when their footprint is large enough that doubling matters (v7x VMEM).
    resident_bytes = (2 * (w1p.size + w2p.size + wop.size)
                      + 4 * (b1p.size + b2p.size + bop.size))
    if resident_bytes >= _SINGLE_BUFFER_RESIDENT_BYTES:
        def res_spec(shape):
            return pl.BlockSpec(shape, lambda i: (0, 0), pipeline_mode=pl.Buffered(1))
        resident_buf = 1
    else:
        def res_spec(shape):
            return pl.BlockSpec(shape, lambda i: (0, 0))
        resident_buf = 2

    # Bump the scoped-VMEM limit only if this configuration needs it.
    tile_bytes = 2 * (tb * d_p * 2 + tb * nc_p * 2)        # double-buffered x/out
    vmem_need = tile_bytes + resident_buf * resident_bytes + (2 << 20)
    vmem_limit = None if vmem_need <= _VMEM_SOFT_LIMIT else min(vmem_need, 128 << 20)

    flops = 2 * b_p * (d_p * h1_p + h1_p * h2_p + h2_p * nc_p)
    bytes_accessed = (
        2 * (xp.size + w1p.size + w2p.size + wop.size)     # bf16 inputs
        + 4 * (b1p.size + b2p.size + bop.size)             # f32 biases
        + 2 * b_p * nc_p                                   # bf16 output
    )

    out_p = pl.pallas_call(
        mlp_kernel,
        out_shape=jax.ShapeDtypeStruct((b_p, nc_p), jnp.bfloat16),
        grid=grid,
        in_specs=[
            # activation tile: software-pipelined across the batch grid
            pl.BlockSpec((tb, d_p), lambda i: (i, 0)),
            # weights & biases: VMEM-resident across all grid steps
            res_spec((d_p, h1_p)),
            res_spec((1, h1_p)),
            res_spec((h1_p, h2_p)),
            res_spec((1, h2_p)),
            res_spec((h2_p, nc_p)),
            res_spec((1, nc_p)),
        ],
        out_specs=pl.BlockSpec((tb, nc_p), lambda i: (i, 0)),
        compiler_params=pltpu.CompilerParams(
            dimension_semantics=("parallel",),
            vmem_limit_bytes=vmem_limit,
        ),
        cost_estimate=pl.CostEstimate(
            flops=flops, transcendentals=0, bytes_accessed=bytes_accessed),
    )(xp, w1p, b1p, w2p, b2p, wop, bop)

    return out_p[:b, :nc].astype(jnp.float32)


def prepare_params(params):
    """One-time padding (lane-dense, multiples of 128) + bf16 cast of weights.

    Weights are stored as (in_features, out_features), i.e. transposed vs
    nn.Linear, so the kernel computes x @ W + b (== x @ W_torch.T + b_torch).
    Biases stay f32 (added after f32 accumulation). Call once, reuse per step.
    """
    w1, b1 = jnp.asarray(params["w1"]), jnp.asarray(params["b1"])
    w2, b2 = jnp.asarray(params["w2"]), jnp.asarray(params["b2"])
    wo, bo = jnp.asarray(params["wo"]), jnp.asarray(params["bo"])
    d, h1 = w1.shape
    h2 = w2.shape[1]
    nc = wo.shape[1]
    d_p, h1_p, h2_p, nc_p = (_round_up(n, LANE) for n in (d, h1, h2, nc))

    def pad2(a, rows, cols, dtype):
        a2 = a.astype(dtype).reshape(-1, a.shape[-1])
        return jnp.pad(a2, ((0, rows - a2.shape[0]), (0, cols - a2.shape[1])))

    return {
        "w1": pad2(w1, d_p, h1_p, jnp.bfloat16),
        "b1": pad2(b1, 1, h1_p, jnp.float32),
        "w2": pad2(w2, h1_p, h2_p, jnp.bfloat16),
        "b2": pad2(b2, 1, h2_p, jnp.float32),
        "wo": pad2(wo, h2_p, nc_p, jnp.bfloat16),
        "bo": pad2(bo, 1, nc_p, jnp.float32),
        "dims": (d, nc),
    }


def mlp_forward(x, prepared, *, tile_b=512):
    """x: [B, C, H, W] or already-flat [B, D]. `prepared` from prepare_params()."""
    d, nc = prepared["dims"]
    return _mlp_forward_jit(
        x, prepared["w1"], prepared["b1"], prepared["w2"], prepared["b2"],
        prepared["wo"], prepared["bo"], tile_b=tile_b, d=d, nc=nc)


def init_params(key, input_dims, n_hiddens, n_class):
    """Deterministic synthetic init. Weights stored as (in, out)."""
    h1, h2 = n_hiddens
    ks = jax.random.split(key, 6)
    scale = lambda fan_in: 1.0 / jnp.sqrt(jnp.float32(fan_in))
    return {
        "w1": jax.random.normal(ks[0], (input_dims, h1), jnp.float32) * scale(input_dims),
        "b1": jax.random.normal(ks[1], (1, h1), jnp.float32) * 0.01,
        "w2": jax.random.normal(ks[2], (h1, h2), jnp.float32) * scale(h1),
        "b2": jax.random.normal(ks[3], (1, h2), jnp.float32) * 0.01,
        "wo": jax.random.normal(ks[4], (h2, n_class), jnp.float32) * scale(h2),
        "bo": jax.random.normal(ks[5], (1, n_class), jnp.float32) * 0.01,
    }


if __name__ == "__main__":
    # Small shapes consistent with the module's forward (flatten then MLP):
    # batch=2, channels=4, spatial=16x16  ->  input_dims = 4*16*16 = 1024
    B, C, H, W = 2, 4, 16, 16
    INPUT_DIMS = C * H * W
    N_HIDDENS = (32, 32)
    N_CLASS = 10

    key = jax.random.PRNGKey(0)
    kx, kp = jax.random.split(key)
    x = jax.random.normal(kx, (B, C, H, W), jnp.float32)
    params = init_params(kp, INPUT_DIMS, N_HIDDENS, N_CLASS)

    prepared = prepare_params(params)          # one-time pad + bf16 cast
    out = mlp_forward(x, prepared)
    out = jax.block_until_ready(out)
    assert out.shape == (B, N_CLASS)

    # Reference in plain JAX with the same mixed-precision path
    # (bf16 inputs/weights, f32 accumulation and elementwise).
    def bf(v):
        return v.astype(jnp.bfloat16).astype(jnp.float32)

    x2d = x.reshape(B, -1)
    h = jnp.maximum(bf(x2d) @ bf(params["w1"]) + params["b1"], 0.0)
    h = jnp.maximum(bf(h) @ bf(params["w2"]) + params["b2"], 0.0)
    ref = bf(h) @ bf(params["wo"]) + params["bo"]

    assert jnp.allclose(out, ref, atol=2e-2, rtol=2e-2), (
        f"max abs err {jnp.max(jnp.abs(out - ref))}")

    print("KERNEL_OK")
</pallas_src>

<mosaic_0001>
module attributes {stable_mosaic.version = 11 : i64} {
  func.func @mlp_kernel(%arg0: i32, %arg1: memref<16x1024xbf16, #tpu.memory_space<vmem>>, %arg2: memref<1024x128xbf16, #tpu.memory_space<vmem>>, %arg3: memref<1x128xf32, #tpu.memory_space<vmem>>, %arg4: memref<128x128xbf16, #tpu.memory_space<vmem>>, %arg5: memref<1x128xf32, #tpu.memory_space<vmem>>, %arg6: memref<128x128xbf16, #tpu.memory_space<vmem>>, %arg7: memref<1x128xf32, #tpu.memory_space<vmem>>, %arg8: memref<16x128xbf16, #tpu.memory_space<vmem>>) attributes {dimension_semantics = [#tpu.dimension_semantics<parallel>], iteration_bounds = array<i64: 1>, scalar_prefetch = 0 : i64, scratch_operands = 0 : i64, tpu.core_type = #tpu.core_type<tc>, window_params = [{transform_indices = @transform_0, window_bounds = array<i64: 16, 1024>}, {pipeline_mode = #tpu.pipeline_mode<synchronous>, transform_indices = @transform_1, window_bounds = array<i64: 1024, 128>}, {pipeline_mode = #tpu.pipeline_mode<synchronous>, transform_indices = @transform_2, window_bounds = array<i64: 1, 128>}, {pipeline_mode = #tpu.pipeline_mode<synchronous>, transform_indices = @transform_3, window_bounds = array<i64: 128, 128>}, {pipeline_mode = #tpu.pipeline_mode<synchronous>, transform_indices = @transform_4, window_bounds = array<i64: 1, 128>}, {pipeline_mode = #tpu.pipeline_mode<synchronous>, transform_indices = @transform_5, window_bounds = array<i64: 128, 128>}, {pipeline_mode = #tpu.pipeline_mode<synchronous>, transform_indices = @transform_6, window_bounds = array<i64: 1, 128>}, {transform_indices = @transform_7, window_bounds = array<i64: 16, 128>}]} {
    %c0 = arith.constant 0 : index
    %c0_0 = arith.constant 0 : index
    %0 = vector.load %arg1[%c0, %c0_0] : memref<16x1024xbf16, #tpu.memory_space<vmem>>, vector<16x1024xbf16>
    %c0_1 = arith.constant 0 : index
    %c0_2 = arith.constant 0 : index
    %1 = vector.load %arg2[%c0_1, %c0_2] : memref<1024x128xbf16, #tpu.memory_space<vmem>>, vector<1024x128xbf16>
    %cst = arith.constant dense<0.000000e+00> : vector<16x128xf32>
    %2 = tpu.matmul %0, %1, %cst {dimension_numbers = #tpu.dot_dimension_numbers<[1], [0], [0], [1], [0, 0, 1, 1], [], []>} : vector<16x1024xbf16>, vector<1024x128xbf16>, vector<16x128xf32> -> vector<16x128xf32>
    %c0_3 = arith.constant 0 : index
    %c0_4 = arith.constant 0 : index
    %3 = vector.load %arg3[%c0_3, %c0_4] : memref<1x128xf32, #tpu.memory_space<vmem>>, vector<1x128xf32>
    %4 = vector.broadcast %3 : vector<1x128xf32> to vector<16x128xf32>
    %5 = arith.addf %2, %4 : vector<16x128xf32>
    %cst_5 = arith.constant 0.000000e+00 : f32
    %6 = vector.broadcast %cst_5 : f32 to vector<16x128xf32>
    %7 = arith.maximumf %5, %6 : vector<16x128xf32>
    %8 = arith.truncf %7 : vector<16x128xf32> to vector<16x128xbf16>
    %c0_6 = arith.constant 0 : index
    %c0_7 = arith.constant 0 : index
    %9 = vector.load %arg4[%c0_6, %c0_7] : memref<128x128xbf16, #tpu.memory_space<vmem>>, vector<128x128xbf16>
    %cst_8 = arith.constant dense<0.000000e+00> : vector<16x128xf32>
    %10 = tpu.matmul %8, %9, %cst_8 {dimension_numbers = #tpu.dot_dimension_numbers<[1], [0], [0], [1], [0, 0, 1, 1], [], []>} : vector<16x128xbf16>, vector<128x128xbf16>, vector<16x128xf32> -> vector<16x128xf32>
    %c0_9 = arith.constant 0 : index
    %c0_10 = arith.constant 0 : index
    %11 = vector.load %arg5[%c0_9, %c0_10] : memref<1x128xf32, #tpu.memory_space<vmem>>, vector<1x128xf32>
    %12 = vector.broadcast %11 : vector<1x128xf32> to vector<16x128xf32>
    %13 = arith.addf %10, %12 : vector<16x128xf32>
    %cst_11 = arith.constant 0.000000e+00 : f32
    %14 = vector.broadcast %cst_11 : f32 to vector<16x128xf32>
    %15 = arith.maximumf %13, %14 : vector<16x128xf32>
    %16 = arith.truncf %15 : vector<16x128xf32> to vector<16x128xbf16>
    %c0_12 = arith.constant 0 : index
    %c0_13 = arith.constant 0 : index
    %17 = vector.load %arg6[%c0_12, %c0_13] : memref<128x128xbf16, #tpu.memory_space<vmem>>, vector<128x128xbf16>
    %cst_14 = arith.constant dense<0.000000e+00> : vector<16x128xf32>
    %18 = tpu.matmul %16, %17, %cst_14 {dimension_numbers = #tpu.dot_dimension_numbers<[1], [0], [0], [1], [0, 0, 1, 1], [], []>} : vector<16x128xbf16>, vector<128x128xbf16>, vector<16x128xf32> -> vector<16x128xf32>
    %c0_15 = arith.constant 0 : index
    %c0_16 = arith.constant 0 : index
    %19 = vector.load %arg7[%c0_15, %c0_16] : memref<1x128xf32, #tpu.memory_space<vmem>>, vector<1x128xf32>
    %20 = vector.broadcast %19 : vector<1x128xf32> to vector<16x128xf32>
    %21 = arith.addf %18, %20 : vector<16x128xf32>
    %22 = arith.truncf %21 : vector<16x128xf32> to vector<16x128xbf16>
    %c0_17 = arith.constant 0 : index
    %c0_18 = arith.constant 0 : index
    %23 = vector.load %arg8[%c0_17, %c0_18] : memref<16x128xbf16, #tpu.memory_space<vmem>>, vector<16x128xbf16>
    tpu.vector_store %arg8[%c0_17, %c0_18], %22 {strides = array<i32>} : memref<16x128xbf16, #tpu.memory_space<vmem>>, vector<16x128xbf16>,
    return
  }
  func.func @transform_0(%arg0: i32) -> (i32, i32) {
    %c0_i32 = arith.constant 0 : i32
    %c0_i32_0 = arith.constant 0 : i32
    return %arg0, %c0_i32 : i32, i32
  }
  func.func @transform_1(%arg0: i32) -> (i32, i32) {
    %c0_i32 = arith.constant 0 : i32
    %c0_i32_0 = arith.constant 0 : i32
    %c0_i32_1 = arith.constant 0 : i32
    return %c0_i32, %c0_i32_0 : i32, i32
  }
  func.func @transform_2(%arg0: i32) -> (i32, i32) {
    %c0_i32 = arith.constant 0 : i32
    %c0_i32_0 = arith.constant 0 : i32
    %c0_i32_1 = arith.constant 0 : i32
    return %c0_i32, %c0_i32_0 : i32, i32
  }
  func.func @transform_3(%arg0: i32) -> (i32, i32) {
    %c0_i32 = arith.constant 0 : i32
    %c0_i32_0 = arith.constant 0 : i32
    %c0_i32_1 = arith.constant 0 : i32
    return %c0_i32, %c0_i32_0 : i32, i32
  }
  func.func @transform_4(%arg0: i32) -> (i32, i32) {
    %c0_i32 = arith.constant 0 : i32
    %c0_i32_0 = arith.constant 0 : i32
    %c0_i32_1 = arith.constant 0 : i32
    return %c0_i32, %c0_i32_0 : i32, i32
  }
  func.func @transform_5(%arg0: i32) -> (i32, i32) {
    %c0_i32 = arith.constant 0 : i32
    %c0_i32_0 = arith.constant 0 : i32
    %c0_i32_1 = arith.constant 0 : i32
    return %c0_i32, %c0_i32_0 : i32, i32
  }
  func.func @transform_6(%arg0: i32) -> (i32, i32) {
    %c0_i32 = arith.constant 0 : i32
    %c0_i32_0 = arith.constant 0 : i32
    %c0_i32_1 = arith.constant 0 : i32
    return %c0_i32, %c0_i32_0 : i32, i32
  }
  func.func @transform_7(%arg0: i32) -> (i32, i32) {
    %c0_i32 = arith.constant 0 : i32
    %c0_i32_0 = arith.constant 0 : i32
    return %arg0, %c0_i32 : i32, i32
  }
}

</mosaic_0001>

<bundles_post_ra>
// kernel: _mlp_forward_jit.1
= control target key start
LH: loop header
LB: loop body
LE: loop exit
PB: predicated region body
PF: predicated region fallthrough
CT: control target
= control target key end

     0   :  { %12 = vsyncpa [#allocation3], 0  ;;  %s1372_s24 = smov [#allocation2]   ;;  %s1531_s0 = inlined_call_operand.vmem [shape: bf16[16,1024], index: 0, kind: input, shape index: {}]   ;;  %s1532_s1 = inlined_call_operand.hbm [shape: bf16[1024,128], index: 1, kind: input, shape index: {}]   ;;  %s1533_s2 = inlined_call_operand.vmem [shape: f32[1,128], index: 2, kind: input, shape index: {}]   ;;  %s1534_s3 = inlined_call_operand.vmem [shape: bf16[128,128], index: 3, kind: input, shape index: {}]   ;;  %s1535_s4 = inlined_call_operand.vmem [shape: f32[1,128], index: 4, kind: input, shape index: {}]   ;;  %s1536_s5 = inlined_call_operand.vmem [shape: bf16[128,128], index: 5, kind: input, shape index: {}]   ;;  %s1537_s6 = inlined_call_operand.vmem [shape: f32[1,128], index: 6, kind: input, shape index: {}]   ;;  %s1538_s7 = inlined_call_operand.vmem [shape: bf16[16,128], index: 7, kind: output, shape index: {}]  }
   0x1   :  { %s20_s25 = sshll.u32 %s1372_s24, 4  ;;  %s1348_s28 = scalar_lea.hbm %s1532_s1, 8192  ;;  %s21_s25 = int_to_ptr.vmem [resolvable:$true] %s20_s25 }
   0x2   :  { %p1349_p0 = scmp.ne.s32.totalorder %s1532_s1, %s1348_s28  ;;  %p1352_p1 = scmp.lt.u32.totalorder %s1348_s28, %s1532_s1 }
   0x4   :  { %p1354_p2 = pnand %p1352_p1, %p1349_p0 }
   0x6   :  { %1357 = shalt.err (!%p1354_p2)
}
   0x7   :  { %s1358_s10 = scalar_lea.vmem %s21_s25, 8192  ;;  %p1363_p4 = scmp.lt.s32.totalorder %s21_s25, %s21_s25 }
   0x8   :  { %p1359_p3 = scmp.ne.s32.totalorder %s21_s25, %s1358_s10  ;;  %p1364_p5 = scmp.lt.s32.totalorder %s1358_s10, %s1358_s10 }
   0xa   :  { %p1365_p6 = por %p1364_p5, %p1363_p4 }
   0xc   :  { %p1366_p7 = pnand %p1365_p6, %p1359_p3 }
   0xe   :  { %1369 = shalt.err (!%p1366_p7)
}
   0xf   :  { %s1373_s11 = smov 64   ;;  %s1374_s12 = smov 4  }
  0x10   :  { %26 = dma.hbm_to_vmem [thread:$0]  %s1532_s1, 8192, %s21_s25, [#allocation3], %s1373_s11, %s1373_s11, %s1374_s12  }
  0x11   :  { %1370 = dma.done.wait [#allocation3], 8192  }
  0x12   :  { %1371 = vsyncadd [#allocation3], 4294959104  ;;  %v1268_v0 = vld [vmem:[#allocation2 + $0x40] sm:$0xff]   ;;  %v1272_v4 = vld [vmem:[#allocation2 + $0x48] sm:$0xff]   ;;  %vm1376_vm0 = vmmov 0  }
  0x13   :  { %v1269_v1 = vld [vmem:[#allocation2 + $0xc0] sm:$0xff]   ;;  %1117 = vmatprep.subr.bf16.mxu0 %v1268_v0  ;;  %v1273_v5 = vld [vmem:[#allocation2 + $0xc8] sm:$0xff]   ;;  %v1276_v8 = vld [vmem:[#allocation2 + $0x50] sm:$0xff]  }
  0x14   :  { %v1270_v2 = vld [vmem:[#allocation2] sm:$0xff]   ;;  %1139 = vmatprep.subr.bf16.mxu1 %v1269_v1  ;;  %v1274_v6 = vld [vmem:[#allocation2 + $0x8] sm:$0xff]   ;;  %v1277_v9 = vld [vmem:[#allocation2 + $0xd0] sm:$0xff]  }
  0x15   :  { %v1271_v3 = vld [vmem:[#allocation2 + $0x80] sm:$0xff]   ;;  %1118 = vmatpush3.bf16.msra.mxu0 %v1270_v2  ;;  %v1275_v7 = vld [vmem:[#allocation2 + $0x88] sm:$0xff]   ;;  %v1278_v10 = vld [vmem:[#allocation2 + $0x10] sm:$0xff]  }
  0x16   :  { %1140 = vmatpush3.bf16.msra.mxu1 %v1271_v3  ;;  %1119 = vmatprep.subr.bf16.mxu0 %v1272_v4  ;;  %v1279_v11 = vld [vmem:[#allocation2 + $0x90] sm:$0xff]   ;;  %v1280_v12 = vld [vmem:[#allocation2 + $0x58] sm:$0xff]   ;;  %v1284_v16 = vld [vmem:[#allocation2 + $0x60] sm:$0xff]  }
  0x17   :  { %1141 = vmatprep.subr.bf16.mxu1 %v1273_v5  ;;  %v1281_v13 = vld [vmem:[#allocation2 + $0xd8] sm:$0xff]   ;;  %v1285_v17 = vld [vmem:[#allocation2 + $0xe0] sm:$0xff]   ;;  %v1288_v20 = vld [vmem:[#allocation2 + $0x68] sm:$0xff]  }
  0x18   :  { %v1282_v14 = vld [vmem:[#allocation2 + $0x18] sm:$0xff]   ;;  %v1286_v18 = vld [vmem:[#allocation2 + $0x20] sm:$0xff]   ;;  %v1289_v21 = vld [vmem:[#allocation2 + $0xe8] sm:$0xff]  }
  0x19   :  { %1120 = vmatpush3.bf16.msra.mxu0 %v1274_v6  ;;  %v1283_v15 = vld [vmem:[#allocation2 + $0x98] sm:$0xff]   ;;  %v1287_v19 = vld [vmem:[#allocation2 + $0xa0] sm:$0xff]   ;;  %v1290_v22 = vld [vmem:[#allocation2 + $0x28] sm:$0xff]  }
  0x1a   :  { %1142 = vmatpush3.bf16.msra.mxu1 %v1275_v7  ;;  %1121 = vmatprep.subr.bf16.mxu0 %v1276_v8  ;;  %v1291_v23 = vld [vmem:[#allocation2 + $0xa8] sm:$0xff]   ;;  %v1292_v24 = vld [vmem:[#allocation2 + $0x70] sm:$0xff]   ;;  %v1296_v28 = vld [vmem:[#allocation2 + $0x78] sm:$0xff]  }
  0x1b   :  { %1143 = vmatprep.subr.bf16.mxu1 %v1277_v9  ;;  %v1293_v25 = vld [vmem:[#allocation2 + $0xf0] sm:$0xff]   ;;  %v1297_v29 = vld [vmem:[#allocation2 + $0xf8] sm:$0xff]   ;;  %v41_v32 = vld [vmem:[%s1531_s0] sm:$0xff] }
  0x1c   :  { %v1294_v26 = vld [vmem:[#allocation2 + $0x30] sm:$0xff]   ;;  %v1298_v30 = vld [vmem:[#allocation2 + $0x38] sm:$0xff]   ;;  %v45_v33 = vld [vmem:[%s1531_s0 + $0x20] sm:$0xff] }
  0x1d   :  { %1122 = vmatpush3.bf16.msra.mxu0 %v1278_v10  ;;  %v1295_v27 = vld [vmem:[#allocation2 + $0xb0] sm:$0xff]   ;;  %v1299_v31 = vld [vmem:[#allocation2 + $0xb8] sm:$0xff]   ;;  %v42_v34 = vld [vmem:[%s1531_s0 + $0x8] sm:$0xff]  ;;  %v1018_v35 = vcombine.low %v41_v32, %v45_v33  ;;  %v1019_v36 = vcombine.high %v41_v32, %v45_v33 }
  0x1e   :  { %1144 = vmatpush3.bf16.msra.mxu1 %v1279_v11  ;;  %1123 = vmatprep.subr.bf16.mxu0 %v1280_v12  ;;  %v46_v37 = vld [vmem:[%s1531_s0 + $0x28] sm:$0xff]  ;;  %v1300_v40 = vld [vmem:[#allocation2 + $0x140] sm:$0xff]   ;;  %v1308_v48 = vld [vmem:[#allocation2 + $0x150] sm:$0xff]  }
  0x1f   :  { %1145 = vmatprep.subr.bf16.mxu1 %v1281_v13  ;;  %v1020_v38 = vcombine.low %v42_v34, %v46_v37  ;;  %v1021_v39 = vcombine.high %v42_v34, %v46_v37  ;;  %640 = vmatprep.mubr.bf16.mxu0 %v1019_v36  ;;  %v1301_v41 = vld [vmem:[#allocation2 + $0x1c0] sm:$0xff]   ;;  %v1304_v44 = vld [vmem:[#allocation2 + $0x148] sm:$0xff]   ;;  %v1309_v49 = vld [vmem:[#allocation2 + $0x1d0] sm:$0xff]  }
  0x20   :  { %v1302_v42 = vld [vmem:[#allocation2 + $0x100] sm:$0xff]   ;;  %v1305_v45 = vld [vmem:[#allocation2 + $0x1c8] sm:$0xff]   ;;  %v1310_v50 = vld [vmem:[#allocation2 + $0x110] sm:$0xff]  }
  0x21   :  { %1124 = vmatpush3.bf16.msra.mxu0 %v1282_v14  ;;  %681 = vmatprep.mubr.bf16.mxu1 %v1021_v39  ;;  %v1303_v43 = vld [vmem:[#allocation2 + $0x180] sm:$0xff]   ;;  %v1306_v46 = vld [vmem:[#allocation2 + $0x108] sm:$0xff]   ;;  %v1311_v51 = vld [vmem:[#allocation2 + $0x190] sm:$0xff]  }
  0x22   :  { %1146 = vmatpush3.bf16.msra.mxu1 %v1283_v15  ;;  %1125 = vmatprep.subr.bf16.mxu0 %v1284_v16  ;;  %v1307_v47 = vld [vmem:[#allocation2 + $0x188] sm:$0xff]   ;;  %v1312_v52 = vld [vmem:[#allocation2 + $0x158] sm:$0xff]   ;;  %v1316_v56 = vld [vmem:[#allocation2 + $0x160] sm:$0xff]  }
  0x23   :  { %1147 = vmatprep.subr.bf16.mxu1 %v1285_v17  ;;  %v1313_v53 = vld [vmem:[#allocation2 + $0x1d8] sm:$0xff]   ;;  %v1317_v57 = vld [vmem:[#allocation2 + $0x1e0] sm:$0xff]   ;;  %v1320_v60 = vld [vmem:[#allocation2 + $0x168] sm:$0xff]   ;;  %v1375_v17 = vmov 0.0  }
  0x24   :  { %v1314_v54 = vld [vmem:[#allocation2 + $0x118] sm:$0xff]   ;;  %v1318_v58 = vld [vmem:[#allocation2 + $0x120] sm:$0xff]   ;;  %v1321_v61 = vld [vmem:[#allocation2 + $0x1e8] sm:$0xff]  }
  0x25   :  { %1126 = vmatpush3.bf16.msra.mxu0 %v1286_v18  ;;  %v1315_v55 = vld [vmem:[#allocation2 + $0x198] sm:$0xff]   ;;  %v1319_v59 = vld [vmem:[#allocation2 + $0x1a0] sm:$0xff]   ;;  %v1322_v62 = vld [vmem:[#allocation2 + $0x128] sm:$0xff]  }
  0x26   :  { %1148 = vmatpush3.bf16.msra.mxu1 %v1287_v19  ;;  %1127 = vmatprep.subr.bf16.mxu0 %v1288_v20  ;;  %v1323_v63 = vld [vmem:[#allocation2 + $0x1a8] sm:$0xff]   ;;  %v1324_v0 = vld [vmem:[#allocation2 + $0x170] sm:$0xff]   ;;  %v1328_v4 = vld [vmem:[#allocation2 + $0x178] sm:$0xff]  }
  0x27   :  { %1149 = vmatprep.subr.bf16.mxu1 %v1289_v21  ;;  %v1325_v1 = vld [vmem:[#allocation2 + $0x1f0] sm:$0xff]   ;;  %v1329_v5 = vld [vmem:[#allocation2 + $0x1f8] sm:$0xff]   ;;  %v1332_v16 = vld [vmem:[%s1534_s3] sm:$0xff]  }
  0x28   :  { %v1326_v2 = vld [vmem:[#allocation2 + $0x130] sm:$0xff]   ;;  %v1330_v6 = vld [vmem:[#allocation2 + $0x138] sm:$0xff]   ;;  %v1333_v18 = vld [vmem:[%s1534_s3 + $0x8] sm:$0xff]  }
  0x29   :  { %1128 = vmatpush3.bf16.msra.mxu0 %v1290_v22  ;;  %v1327_v3 = vld [vmem:[#allocation2 + $0x1b0] sm:$0xff]   ;;  %v1331_v7 = vld [vmem:[#allocation2 + $0x1b8] sm:$0xff]   ;;  %v1336_v21 = vld [vmem:[%s1534_s3 + $0x20] sm:$0xff]  }
  0x2a   :  { %1150 = vmatpush3.bf16.msra.mxu1 %v1291_v23  ;;  %1129 = vmatprep.subr.bf16.mxu0 %v1292_v24  ;;  %v43_v8 = vld [vmem:[%s1531_s0 + $0x10] sm:$0xff]  ;;  %v44_v12 = vld [vmem:[%s1531_s0 + $0x18] sm:$0xff]  ;;  %v1337_v22 = vld [vmem:[%s1534_s3 + $0x28] sm:$0xff]  }
  0x2b   :  { %1151 = vmatprep.subr.bf16.mxu1 %v1293_v25  ;;  %v47_v9 = vld [vmem:[%s1531_s0 + $0x30] sm:$0xff]  ;;  %v48_v13 = vld [vmem:[%s1531_s0 + $0x38] sm:$0xff]  ;;  %v1340_v25 = vld [vmem:[%s1536_s5] sm:$0xff]  }
  0x2c   :  { %v1022_v10 = vcombine.low %v43_v8, %v47_v9  ;;  %v1023_v11 = vcombine.high %v43_v8, %v47_v9  ;;  %v1024_v14 = vcombine.low %v44_v12, %v48_v13  ;;  %v1025_v15 = vcombine.high %v44_v12, %v48_v13  ;;  %v1334_v19 = vld [vmem:[%s1534_s3 + $0x10] sm:$0xff]   ;;  %v1335_v20 = vld [vmem:[%s1534_s3 + $0x18] sm:$0xff]   ;;  %v1017_v33 = vld [vmem:[%s1533_s2] ss:$0 sm:$0xff] }
  0x2d   :  { %1130 = vmatpush3.bf16.msra.mxu0 %v1294_v26  ;;  %v1338_v23 = vld [vmem:[%s1534_s3 + $0x30] sm:$0xff]   ;;  %v1339_v24 = vld [vmem:[%s1534_s3 + $0x38] sm:$0xff]   ;;  %v1341_v26 = vld [vmem:[%s1536_s5 + $0x8] sm:$0xff]  }
  0x2e   :  { %1152 = vmatpush3.bf16.msra.mxu1 %v1295_v27  ;;  %1131 = vmatprep.subr.bf16.mxu0 %v1296_v28  ;;  %v1342_v27 = vld [vmem:[%s1536_s5 + $0x10] sm:$0xff]   ;;  %v1343_v28 = vld [vmem:[%s1536_s5 + $0x18] sm:$0xff]  }
  0x2f   :  { %1153 = vmatprep.subr.bf16.mxu1 %v1297_v29  ;;  %v1344_v29 = vld [vmem:[%s1536_s5 + $0x20] sm:$0xff]  }
  0x31   :  { %1132 = vmatpush3.bf16.msra.mxu0 %v1298_v30  ;;  %v1345_v30 = vld [vmem:[%s1536_s5 + $0x28] sm:$0xff]  }
  0x32   :  { %1154 = vmatpush3.bf16.msra.mxu1 %v1299_v31  ;;  %1161 = vmatprep.subr.bf16.mxu0 %v1300_v40 }
  0x33   :  { %1183 = vmatprep.subr.bf16.mxu1 %v1301_v41 }
  0x34   :  { %641 = vmatmul.mubr.bf16.vlgmr.msra.gmra.mrb[0].mxu0 %v1018_v35 }
  0x35   :  { %682 = vmatmul.mubr.bf16.vlgmr.msra.gmra.mrb[0].mxu1 %v1020_v38  ;;  %1162 = vmatpush3.bf16.msra.mxu0 %v1302_v42 }
  0x36   :  { %1184 = vmatpush3.bf16.msra.mxu1 %v1303_v43  ;;  %1163 = vmatprep.subr.bf16.mxu0 %v1304_v44 }
  0x37   :  { %1185 = vmatprep.subr.bf16.mxu1 %v1305_v45  ;;  %722 = vmatprep.mubr.bf16.mxu0 %v1023_v11 }
  0x38   :  { %763 = vmatprep.mubr.bf16.mxu1 %v1025_v15  ;;  %v1099_v15 = vld [vmem:[%s1537_s6] ss:$0 sm:$0xff] }
  0x39   :  { %1164 = vmatpush3.bf16.msra.mxu0 %v1306_v46 }
  0x3a   :  { %1186 = vmatpush3.bf16.msra.mxu1 %v1307_v47  ;;  %1165 = vmatprep.subr.bf16.mxu0 %v1308_v48 }
  0x3b   :  { %1187 = vmatprep.subr.bf16.mxu1 %v1309_v49 }
  0x3d   :  { %1166 = vmatpush3.bf16.msra.mxu0 %v1310_v50 }
  0x3e   :  { %1188 = vmatpush3.bf16.msra.mxu1 %v1311_v51  ;;  %1167 = vmatprep.subr.bf16.mxu0 %v1312_v52 }
  0x3f   :  { %1189 = vmatprep.subr.bf16.mxu1 %v1313_v53 }
  0x41   :  { %1168 = vmatpush3.bf16.msra.mxu0 %v1314_v54 }
  0x42   :  { %1190 = vmatpush3.bf16.msra.mxu1 %v1315_v55  ;;  %1169 = vmatprep.subr.bf16.mxu0 %v1316_v56 }
  0x43   :  { %1191 = vmatprep.subr.bf16.mxu1 %v1317_v57 }
  0x45   :  { %1170 = vmatpush3.bf16.msra.mxu0 %v1318_v58 }
  0x46   :  { %1192 = vmatpush3.bf16.msra.mxu1 %v1319_v59  ;;  %1171 = vmatprep.subr.bf16.mxu0 %v1320_v60 }
  0x47   :  { %1193 = vmatprep.subr.bf16.mxu1 %v1321_v61 }
  0x49   :  { %1172 = vmatpush3.bf16.msra.mxu0 %v1322_v62 }
  0x4a   :  { %1194 = vmatpush3.bf16.msra.mxu1 %v1323_v63  ;;  %1173 = vmatprep.subr.bf16.mxu0 %v1324_v0 }
  0x4b   :  { %1195 = vmatprep.subr.bf16.mxu1 %v1325_v1 }
  0x4d   :  { %1174 = vmatpush3.bf16.msra.mxu0 %v1326_v2 }
  0x4e   :  { %1196 = vmatpush3.bf16.msra.mxu1 %v1327_v3  ;;  %1175 = vmatprep.subr.bf16.mxu0 %v1328_v4  ;;  %v1346_v3 = vld [vmem:[%s1536_s5 + $0x30] sm:$0xff]   ;;  %v1347_v4 = vld [vmem:[%s1536_s5 + $0x38] sm:$0xff]  }
  0x4f   :  { %1197 = vmatprep.subr.bf16.mxu1 %v1329_v5  ;;  %v1090_v5 = vld [vmem:[%s1535_s4] ss:$0 sm:$0xff] }
  0x51   :  { %1176 = vmatpush3.bf16.msra.mxu0 %v1330_v6 }
  0x52   :  { %1198 = vmatpush3.bf16.msra.mxu1 %v1331_v7  ;;  %1223 = vmatprep.subr.bf16.mxu0 %v1375_v17 }
  0x53   :  { %1243 = vmatprep.subr.bf16.mxu1 %v1375_v17 }
  0x54   :  { %723 = vmatmul.mubr.bf16.vlgmr.msra.gmra.mrb[4].mxu0 %v1022_v10 }
  0x55   :  { %764 = vmatmul.mubr.bf16.vlgmr.msra.gmra.mrb[4].mxu1 %v1024_v14  ;;  %1224 = vmatpush3.bf16.msra.mxu0 %v1332_v16 }
  0x56   :  { %1225 = vmatprep.subr.bf16.mxu0 %v1375_v17  ;;  %1239 = vmatprep.mubr.msk.bf16.mxu0 %vm1376_vm0, %v1375_v17 }
  0x57   :  { %1259 = vmatprep.mubr.msk.bf16.mxu1 %vm1376_vm0, %v1375_v17  ;;  %1244 = vmatpush3.bf16.msra.mxu1 %v1340_v25 }
  0x58   :  { %1245 = vmatprep.subr.bf16.mxu1 %v1375_v17 }
  0x59   :  { %1226 = vmatpush3.bf16.msra.mxu0 %v1333_v18 }
  0x5a   :  { %1227 = vmatprep.subr.bf16.mxu0 %v1375_v17 }
  0x5b   :  { %1246 = vmatpush3.bf16.msra.mxu1 %v1341_v26 }
  0x5c   :  { %1247 = vmatprep.subr.bf16.mxu1 %v1375_v17 }
  0x5d   :  { %1228 = vmatpush3.bf16.msra.mxu0 %v1334_v19 }
  0x5e   :  { %1229 = vmatprep.subr.bf16.mxu0 %v1375_v17 }
  0x5f   :  { %1248 = vmatpush3.bf16.msra.mxu1 %v1342_v27 }
  0x60   :  { %1249 = vmatprep.subr.bf16.mxu1 %v1375_v17 }
  0x61   :  { %1230 = vmatpush3.bf16.msra.mxu0 %v1335_v20 }
  0x62   :  { %1231 = vmatprep.subr.bf16.mxu0 %v1375_v17 }
  0x63   :  { %1250 = vmatpush3.bf16.msra.mxu1 %v1343_v28 }
  0x64   :  { %1251 = vmatprep.subr.bf16.mxu1 %v1375_v17 }
  0x65   :  { %1232 = vmatpush3.bf16.msra.mxu0 %v1336_v21 }
  0x66   :  { %1233 = vmatprep.subr.bf16.mxu0 %v1375_v17 }
  0x67   :  { %1252 = vmatpush3.bf16.msra.mxu1 %v1344_v29 }
  0x68   :  { %1253 = vmatprep.subr.bf16.mxu1 %v1375_v17 }
  0x69   :  { %1234 = vmatpush3.bf16.msra.mxu0 %v1337_v22 }
  0x6a   :  { %1235 = vmatprep.subr.bf16.mxu0 %v1375_v17 }
  0x6b   :  { %1254 = vmatpush3.bf16.msra.mxu1 %v1345_v30 }
  0x6c   :  { %1255 = vmatprep.subr.bf16.mxu1 %v1375_v17 }
  0x6d   :  { %1236 = vmatpush3.bf16.msra.mxu0 %v1338_v23 }
  0x6e   :  { %1237 = vmatprep.subr.bf16.mxu0 %v1375_v17 }
  0x6f   :  { %1256 = vmatpush3.bf16.msra.mxu1 %v1346_v3 }
  0x70   :  { %1257 = vmatprep.subr.bf16.mxu1 %v1375_v17 }
  0x71   :  { %1238 = vmatpush3.bf16.msra.mxu0 %v1339_v24 }
  0x73   :  { %1258 = vmatpush3.bf16.msra.mxu1 %v1347_v4 }
 0x107   :  { %v1133_v31 = vpop.f32.mrb[0].mxu0 }
 0x108   :  { %v1155_v32 = vpop.f32.mrb[0].mxu1  ;;  %v1134_v34 = vpop.f32.mrb[1].mxu0 }
 0x109   :  { %v1135_v35 = vadd.f32 %v1134_v34, %v1133_v31  ;;  %v1156_v36 = vpop.f32.mrb[1].mxu1  ;;  %v1136_v37 = vpop.f32.mrb[2].mxu0 }
 0x10a   :  { %v1157_v38 = vadd.f32 %v1156_v36, %v1155_v32  ;;  %v1158_v39 = vpop.f32.mrb[2].mxu1  ;;  %v1137_v40 = vpop.f32.mrb[3].mxu0 }
 0x10b   :  { %v643_v41 = vadd.f32 %v1135_v35, %v1017_v33  ;;  %v1138_v42 = vadd.f32 %v1137_v40, %v1136_v37  ;;  %v1159_v43 = vpop.f32.mrb[3].mxu1 }
 0x10c   :  { %v1160_v44 = vadd.f32 %v1159_v43, %v1158_v39 }
 0x10d   :  { %v684_v45 = vadd.f32 %v1157_v38, %v643_v41  ;;  %v646_v46 = vadd.f32 %v1138_v42, %v1017_v33 }
 0x10f   :  { %v687_v47 = vadd.f32 %v1160_v44, %v646_v46 }
 0x127   :  { %v1177_v48 = vpop.f32.mrb[4].mxu0 }
 0x128   :  { %v1199_v49 = vpop.f32.mrb[4].mxu1  ;;  %v1178_v50 = vpop.f32.mrb[5].mxu0 }
 0x129   :  { %v1179_v51 = vadd.f32 %v1178_v50, %v1177_v48  ;;  %v1200_v52 = vpop.f32.mrb[5].mxu1  ;;  %v1180_v53 = vpop.f32.mrb[6].mxu0 }
 0x12a   :  { %v1201_v54 = vadd.f32 %v1200_v52, %v1199_v49  ;;  %v1202_v55 = vpop.f32.mrb[6].mxu1  ;;  %v1181_v56 = vpop.f32.mrb[7].mxu0 }
 0x12b   :  { %v725_v57 = vadd.f32 %v1179_v51, %v684_v45  ;;  %v1182_v58 = vadd.f32 %v1181_v56, %v1180_v53  ;;  %v1203_v59 = vpop.f32.mrb[7].mxu1 }
 0x12c   :  { %v1204_v60 = vadd.f32 %v1203_v59, %v1202_v55 }
 0x12d   :  { %v766_v61 = vadd.f32 %v1201_v54, %v725_v57  ;;  %v728_v62 = vadd.f32 %v1182_v58, %v687_v47 }
 0x12f   :  { %v769_v63 = vadd.f32 %v1204_v60, %v728_v62  ;;  %v772_v0 = vmax.f32 %v766_v61, 0.0 }
 0x131   :  { %v773_v1 = vmax.f32 %v769_v63, 0.0 }
 0x133   :  { %v774_v2 = vpack.c.bf16 %v773_v1, %v772_v0 }
 0x135   :  { %1240 = vmatmul.mubr.bf16.vlgmr.msra.gmra.mrb[8].mxu0 %v774_v2 }
 0x208   :  { %v880_v6 = vpop.f32.mrb[8].mxu0 }
 0x209   :  { %v881_v7 = vadd.f32 %v1090_v5, %v880_v6  ;;  %v1241_v8 = vpop.f32.mrb[9].mxu0 }
 0x20a   :  { %v883_v9 = vpop.f32.mrb[10].mxu0 }
 0x20b   :  { %v884_v10 = vadd.f32 %v1090_v5, %v883_v9  ;;  %v1242_v11 = vpop.f32.mrb[11].mxu0  ;;  %v887_v12 = vmax.f32 %v881_v7, 0.0 }
 0x20d   :  { %v888_v13 = vmax.f32 %v884_v10, 0.0 }
 0x20f   :  { %v889_v14 = vpack.c.bf16 %v888_v13, %v887_v12 }
 0x211   :  { %1260 = vmatmul.mubr.bf16.vlgmr.msra.gmra.mrb[8].mxu1 %v889_v14 }
 0x2e4   :  { %v995_v16 = vpop.f32.mrb[8].mxu1 }
 0x2e5   :  { %v1261_v17 = vpop.f32.mrb[9].mxu1  ;;  %v996_v19 = vadd.f32 %v1099_v15, %v995_v16 }
 0x2e6   :  { %v998_v18 = vpop.f32.mrb[10].mxu1 }
 0x2e7   :  { %v999_v20 = vadd.f32 %v1099_v15, %v998_v18  ;;  %v1262_v21 = vpop.f32.mrb[11].mxu1 }
 0x2e9   :  { %v1115_v22 = vpack.c.bf16 %v999_v20, %v996_v19 }
 0x2eb   :  { %1116 = vst [vmem:[%s1538_s7] sm:$0xff] %v1115_v22  }
 0x2ec   :  { %1016 = vsyncpa [#allocation3], 1 }

</bundles_post_ra>
